<compile_context>
chip_gen: v6e
topology: v6e:2x2x1
jax: 0.10.0
libtpu: 0.0.40
codegen_flags: <defaults>
</compile_context>

<pallas_src>
import jax
import jax.numpy as jnp
from jax.experimental import pallas as pl
from jax.experimental.pallas import tpu as pltpu

STRIDE = 2
PAD = 2


def _conv_tanh_kernel(x_ref, w_ref, b_ref, o_ref):
    # x_ref: (1, 16*Cin, Qp) pre-shifted, phase-split input (zeros in pad lanes)
    # w_ref: (Cout, 16*Cin)  flattened weights (zero columns for out-of-range taps)
    # b_ref: (Cout, 1)       bias
    # o_ref: (1, Cout, Qp)   conv+tanh on the flattened phase grid (junk in pad lanes)
    acc = jnp.dot(w_ref[...], x_ref[0], preferred_element_type=jnp.float32)
    o_ref[0] = jnp.tanh(acc + b_ref[...])


def model_tanh_forward(x, weight, bias):
    """x: (N, Cin, H, W) f32; weight: (Cout, Cin, 3, 3); bias: (Cout,). Returns NCHW."""
    n, cin, h, w = x.shape
    cout, _, kh, kw = weight.shape
    ho = (h + 2 * PAD - kh) // STRIDE + 1
    wo = (w + 2 * PAD - kw) // STRIDE + 1

    # Stride-phase grid of the padded image; pad a little extra on the bottom/right so
    # every strided sub-sample below (offset up to 3, stride 2, length hq/wq) is in-bounds.
    hp, wp = h + 2 * PAD, w + 2 * PAD
    hq, wq = (hp + 1) // 2, (wp + 1) // 2
    hp_e, wp_e = 2 * hq + 2, 2 * wq + 2
    xp = jnp.pad(x, ((0, 0), (0, 0),
                     (PAD, hp_e - h - PAD), (PAD, wp_e - w - PAD)))

    # Pre-shifted phase split (the "hoisted shifts"):
    #   xs[n, ((di*2+dj)*4 + (pi*2+pj))*Cin + ci, hq_*Wq + wq_]
    #     = xp[n, ci, 2*hq_ + (2*di+pi), 2*wq_ + (2*dj+pj)]
    # i.e. 16 strided sub-samples of the padded image, stacked along channels.  This is
    # the only wrapper-side layout work besides the pad (fuses into one XLA op, ~0.5 MB).
    groups = []
    for di in range(2):
        for dj in range(2):
            for pi in range(2):
                for pj in range(2):
                    i, j = 2 * di + pi, 2 * dj + pj
                    groups.append(xp[:, :, i:i + 2 * hq:2, j:j + 2 * wq:2])
    q = hq * wq
    qp = ((q + 127) // 128) * 128          # lane-dense output: Q padded to mult. of 128
    xs = jnp.stack(groups, axis=1).reshape(n, 16 * cin, q)
    xs = jnp.pad(xs, ((0, 0), (0, 0), (0, qp - q)))

    # Matching flattened weights: column ((di*2+dj)*4 + (pi*2+pj))*Cin + ci holds
    # weight[:, ci, 2*di+pi, 2*dj+pj] (zero when the tap index is outside the 3x3 kernel).
    wflat = jnp.zeros((cout, 16 * cin), weight.dtype)
    for di in range(2):
        for dj in range(2):
            for pi in range(2):
                for pj in range(2):
                    i, j = 2 * di + pi, 2 * dj + pj
                    if i < kh and j < kw:
                        col = ((di * 2 + dj) * 4 + (pi * 2 + pj)) * cin
                        wflat = wflat.at[:, col:col + cin].set(weight[:, :, i, j])
    b2 = bias.reshape(cout, 1).astype(jnp.float32)

    out_flat = pl.pallas_call(
        _conv_tanh_kernel,
        out_shape=jax.ShapeDtypeStruct((n, cout, qp), jnp.float32),
        grid=(n,),
        in_specs=[
            pl.BlockSpec((1, 16 * cin, qp), lambda b: (b, 0, 0)),
            pl.BlockSpec((cout, 16 * cin), lambda b: (0, 0)),
            pl.BlockSpec((cout, 1), lambda b: (0, 0)),
        ],
        out_specs=pl.BlockSpec((1, cout, qp), lambda b: (b, 0, 0)),
        compiler_params=pltpu.CompilerParams(
            dimension_semantics=("parallel",)),
    )(xs, wflat, b2)

    # Drop lane padding + phase-grid padding and recover NCHW (reshape + slice only).
    out = out_flat[:, :, :q].reshape(n, cout, hq, wq)[:, :, :ho, :wo]
    return out


if __name__ == "__main__":
    key = jax.random.PRNGKey(0)
    kx, kwt, kb = jax.random.split(key, 3)

    # Shapes consistent with the module: Cin=3 -> Cout=64, 3x3 kernel; small batch.
    x = jax.random.normal(kx, (2, 3, 64, 64), dtype=jnp.float32)
    cin, cout, k = 3, 64, 3
    fan_in = cin * k * k
    bound = 1.0 / (fan_in ** 0.5)
    weight = jax.random.uniform(kwt, (cout, cin, k, k), jnp.float32, -bound, bound)
    bias = jax.random.uniform(kb, (cout,), jnp.float32, -bound, bound)

    fwd = jax.jit(model_tanh_forward)
    y = fwd(x, weight, bias)
    jax.block_until_ready(y)
    assert y.shape == (2, 64, 33, 33), y.shape

    # Reference check against XLA's conv (full f32 precision) + tanh.
    ref = jax.lax.conv_general_dilated(
        x, weight, window_strides=(STRIDE, STRIDE),
        padding=((PAD, PAD), (PAD, PAD)),
        dimension_numbers=("NCHW", "OIHW", "NCHW"),
        precision=jax.lax.Precision.HIGHEST)
    ref = jnp.tanh(ref + bias[None, :, None, None])
    err = float(jnp.max(jnp.abs(y - ref)))
    assert err < 1e-3, err

    print("KERNEL_OK")
</pallas_src>

<mosaic_0001>
module attributes {stable_mosaic.version = 11 : i64} {
  func.func @_conv_tanh_kernel(%arg0: i32, %arg1: memref<1x48x1280xf32, #tpu.memory_space<vmem>>, %arg2: memref<64x48xf32, #tpu.memory_space<vmem>>, %arg3: memref<64x1xf32, #tpu.memory_space<vmem>>, %arg4: memref<1x64x1280xf32, #tpu.memory_space<vmem>>) attributes {dimension_semantics = [#tpu.dimension_semantics<parallel>], iteration_bounds = array<i64: 2>, scalar_prefetch = 0 : i64, scratch_operands = 0 : i64, tpu.core_type = #tpu.core_type<tc>, window_params = [{transform_indices = @transform_0, window_bounds = array<i64: 1, 48, 1280>}, {pipeline_mode = #tpu.pipeline_mode<synchronous>, transform_indices = @transform_1, window_bounds = array<i64: 64, 48>}, {pipeline_mode = #tpu.pipeline_mode<synchronous>, transform_indices = @transform_2, window_bounds = array<i64: 64, 1>}, {transform_indices = @transform_3, window_bounds = array<i64: 1, 64, 1280>}]} {
    %c0 = arith.constant 0 : index
    %c0_0 = arith.constant 0 : index
    %0 = vector.load %arg2[%c0, %c0_0] : memref<64x48xf32, #tpu.memory_space<vmem>>, vector<64x48xf32>
    %c0_1 = arith.constant 0 : index
    %c0_2 = arith.constant 0 : index
    %c0_3 = arith.constant 0 : index
    %1 = vector.load %arg1[%c0_1, %c0_2, %c0_3] : memref<1x48x1280xf32, #tpu.memory_space<vmem>>, vector<1x48x1280xf32>
    %2 = vector.shape_cast %1 : vector<1x48x1280xf32> to vector<48x1280xf32>
    %cst = arith.constant dense<0.000000e+00> : vector<64x1280xf32>
    %3 = tpu.matmul %0, %2, %cst {dimension_numbers = #tpu.dot_dimension_numbers<[1], [0], [0], [1], [0, 0, 1, 1], [], []>} : vector<64x48xf32>, vector<48x1280xf32>, vector<64x1280xf32> -> vector<64x1280xf32>
    %c0_4 = arith.constant 0 : index
    %c0_5 = arith.constant 0 : index
    %4 = vector.load %arg3[%c0_4, %c0_5] : memref<64x1xf32, #tpu.memory_space<vmem>>, vector<64x1xf32>
    %5 = vector.broadcast %4 : vector<64x1xf32> to vector<64x1280xf32>
    %6 = arith.addf %3, %5 : vector<64x1280xf32>
    %7 = math.tanh %6 : vector<64x1280xf32>
    %c0_6 = arith.constant 0 : index
    %c0_7 = arith.constant 0 : index
    %c0_8 = arith.constant 0 : index
    %8 = vector.load %arg4[%c0_6, %c0_7, %c0_8] : memref<1x64x1280xf32, #tpu.memory_space<vmem>>, vector<1x64x1280xf32>
    %9 = vector.shape_cast %8 : vector<1x64x1280xf32> to vector<64x1280xf32>
    %10 = vector.shape_cast %7 : vector<64x1280xf32> to vector<1x64x1280xf32>
    tpu.vector_store %arg4[%c0_6, %c0_7, %c0_8], %10 {strides = array<i32>} : memref<1x64x1280xf32, #tpu.memory_space<vmem>>, vector<1x64x1280xf32>,
    return
  }
  func.func @transform_0(%arg0: i32) -> (i32, i32, i32) {
    %c0_i32 = arith.constant 0 : i32
    %c0_i32_0 = arith.constant 0 : i32
    %c0_i32_1 = arith.constant 0 : i32
    return %arg0, %c0_i32, %c0_i32_0 : i32, i32, i32
  }
  func.func @transform_1(%arg0: i32) -> (i32, i32) {
    %c0_i32 = arith.constant 0 : i32
    %c0_i32_0 = arith.constant 0 : i32
    %c0_i32_1 = arith.constant 0 : i32
    return %c0_i32, %c0_i32_0 : i32, i32
  }
  func.func @transform_2(%arg0: i32) -> (i32, i32) {
    %c0_i32 = arith.constant 0 : i32
    %c0_i32_0 = arith.constant 0 : i32
    %c0_i32_1 = arith.constant 0 : i32
    return %c0_i32, %c0_i32_0 : i32, i32
  }
  func.func @transform_3(%arg0: i32) -> (i32, i32, i32) {
    %c0_i32 = arith.constant 0 : i32
    %c0_i32_0 = arith.constant 0 : i32
    %c0_i32_1 = arith.constant 0 : i32
    return %arg0, %c0_i32, %c0_i32_0 : i32, i32, i32
  }
}

</mosaic_0001>

<bundles_post_ra>
// kernel: model_tanh_forward.1
= control target key start
LH: loop header
LB: loop body
LE: loop exit
PB: predicated region body
PF: predicated region fallthrough
CT: control target
= control target key end

     0   :  { %s1357_s12 = smov 0   ;;  %s1802_s0 = inlined_call_operand.vmem [shape: f32[2,48,1280], index: 0, kind: input, shape index: {}]   ;;  %s1803_s1 = inlined_call_operand.vmem [shape: f32[64,48], index: 1, kind: input, shape index: {}]   ;;  %s1804_s2 = inlined_call_operand.vmem [shape: f32[64,1], index: 2, kind: input, shape index: {}]   ;;  %s1805_s3 = inlined_call_operand.vmem [shape: f32[2,64,1280], index: 3, kind: output, shape index: {}]  }
   0x1 LB: > { %s1092_s13 = sadd.s32 4294967295, %s1333_s12   ;;  %p1096_p0 = scmp.ge.s32.totalorder %s1333_s12, 1  ;;  %s1333_s12 = sphi %s1357_s12, %s13_s12  }
   0x2   : > { %p137_p1 = scmp.lt.s32.totalorder %s1333_s12, 3 }
   0x4   : > { %p138_p2 = pnand %p1096_p0, %p137_p1 }
   0x5   : > { %p161_p3 = scmp.lt.s32.totalorder (!%p138_p2), %s1092_s13, 1 }
   0x6   : > { %141 = sbr.rel (%p138_p2) target bundleno = 321 (0x141), region = 32 }
   0xb   : > { %v1335_v0 = vmov 0.0   ;;  %s1807_s13 = smov (!%p161_p3, %s1092_s13), 1  ;;  %v1336_v1 = vmov 0   ;;  %v239_v2 = vld [vmem:[%s1804_s2] sm:$0xff]  ;;  %v241_v3 = vld [vmem:[%s1804_s2 + $0x10] sm:$0xff]  ;;  %v240_v4 = vld [vmem:[%s1804_s2 + $0x8] sm:$0xff] }
   0xc   : > { %376 = vmatprep.mubr.f32.mxu0 %v1335_v0  ;;  %400 = vmatprep.mubr.f32.mxu1 %v1335_v0  ;;  %s1153_s18 = smul.u32 480, %s1807_s13  ;;  %v1399_v17 = vld [vmem:[%s1803_s1] sm:$0xff]  ;;  %vm287_vm0 = vcmask 392192   ;;  %v1419_v25 = vld [vmem:[%s1803_s1 + $0x8] sm:$0xff]  ;;  %v1441_v33 = vld [vmem:[%s1803_s1 + $0x10] sm:$0xff] }
   0xd   : > { %1165 = vset.pattern.permute.xlu0 %v1336_v1  ;;  %1166 = vset.pattern.permute.xlu1 %v1336_v1  ;;  %v1404_v18 = vld [vmem:[%s1803_s1 + $0x20] sm:$0xff]  ;;  %v1424_v26 = vld [vmem:[%s1803_s1 + $0x28] sm:$0xff]  ;;  %v1446_v34 = vld [vmem:[%s1803_s1 + $0x30] sm:$0xff]  ;;  %s1154_s25 = smul.u32 640, %s1807_s13 }
   0xe   : > { %249 = vperm.xlu0 %1165, %v239_v2   ;;  %259 = vperm.xlu1 %1166, %v241_v3   ;;  %s1382_s23 = scalar_lea.vmem %s1802_s0, %s1153_s18  ;;  %v1463_v41 = vld [vmem:[%s1803_s1 + $0x18] sm:$0xff] }
   0xf   : > { %v230_v5 = vld [vmem:[%s1382_s23 + $0x198] sm:$0xff]  ;;  %v229_v6 = vld [vmem:[%s1382_s23 + $0x190] sm:$0xff]  ;;  %v220_v7 = vld [vmem:[%s1382_s23 + $0x148] sm:$0xff]  ;;  %s1649_s13 = scalar_lea.vmem %s1805_s3, %s1154_s25 }
  0x10   : > { %332 = vmatprep.subr.mxu0 %v230_v5  ;;  %1141 = vmatprep.subr.mxu1 %v230_v5  ;;  %v219_v8 = vld [vmem:[%s1382_s23 + $0x140] sm:$0xff]  ;;  %v210_v9 = vld [vmem:[%s1382_s23 + $0xf8] sm:$0xff]  ;;  %v209_v10 = vld [vmem:[%s1382_s23 + $0xf0] sm:$0xff] }
  0x11   : > { %333 = vmatpush1.msra.mxu0 %v229_v6  ;;  %1147 = vmatpush1.msra.mxu1 %v229_v6  ;;  %v200_v11 = vld [vmem:[%s1382_s23 + $0xa8] sm:$0xff]  ;;  %v199_v12 = vld [vmem:[%s1382_s23 + $0xa0] sm:$0xff]  ;;  %v190_v13 = vld [vmem:[%s1382_s23 + $0x58] sm:$0xff] }
  0x12   : > { %254 = vperm.xlu0 %1165, %v240_v4   ;;  %334 = vmatprep.subr.mxu0 %v220_v7  ;;  %v189_v14 = vld [vmem:[%s1382_s23 + $0x50] sm:$0xff]  ;;  %v180_v15 = vld [vmem:[%s1382_s23 + $0x8] sm:$0xff]  ;;  %v179_v16 = vld [vmem:[%s1382_s23] sm:$0xff] }
  0x13   : > { %1142 = vmatprep.subr.mxu1 %v220_v7  ;;  %335 = vmatpush1.msra.mxu0 %v219_v8  ;;  %v232_v19 = vld [vmem:[%s1382_s23 + $0x1a8] sm:$0xff]  ;;  %v234_v20 = vld [vmem:[%s1382_s23 + $0x1b8] sm:$0xff]  ;;  %v231_v21 = vld [vmem:[%s1382_s23 + $0x1a0] sm:$0xff] }
  0x14   : > { %1148 = vmatpush1.msra.mxu1 %v219_v8  ;;  %336 = vmatprep.subr.mxu0 %v210_v9  ;;  %v233_v22 = vld [vmem:[%s1382_s23 + $0x1b0] sm:$0xff]  ;;  %v222_v23 = vld [vmem:[%s1382_s23 + $0x158] sm:$0xff]  ;;  %v224_v24 = vld [vmem:[%s1382_s23 + $0x168] sm:$0xff] }
  0x15   : > { %1143 = vmatprep.subr.mxu1 %v210_v9  ;;  %337 = vmatpush1.msra.mxu0 %v209_v10  ;;  %v221_v27 = vld [vmem:[%s1382_s23 + $0x150] sm:$0xff]  ;;  %v223_v28 = vld [vmem:[%s1382_s23 + $0x160] sm:$0xff]  ;;  %v212_v29 = vld [vmem:[%s1382_s23 + $0x108] sm:$0xff] }
  0x16   : > { %1149 = vmatpush1.msra.mxu1 %v209_v10  ;;  %338 = vmatprep.subr.mxu0 %v200_v11  ;;  %v214_v30 = vld [vmem:[%s1382_s23 + $0x118] sm:$0xff]  ;;  %v211_v31 = vld [vmem:[%s1382_s23 + $0x100] sm:$0xff]  ;;  %v213_v32 = vld [vmem:[%s1382_s23 + $0x110] sm:$0xff] }
  0x17   : > { %1144 = vmatprep.subr.mxu1 %v200_v11  ;;  %339 = vmatpush1.msra.mxu0 %v199_v12  ;;  %v202_v35 = vld [vmem:[%s1382_s23 + $0xb8] sm:$0xff]  ;;  %v204_v36 = vld [vmem:[%s1382_s23 + $0xc8] sm:$0xff]  ;;  %v201_v37 = vld [vmem:[%s1382_s23 + $0xb0] sm:$0xff] }
  0x18   : > { %1150 = vmatpush1.msra.mxu1 %v199_v12  ;;  %340 = vmatprep.subr.mxu0 %v190_v13  ;;  %v203_v38 = vld [vmem:[%s1382_s23 + $0xc0] sm:$0xff]  ;;  %v192_v39 = vld [vmem:[%s1382_s23 + $0x68] sm:$0xff]  ;;  %v194_v40 = vld [vmem:[%s1382_s23 + $0x78] sm:$0xff] }
  0x19   : > { %1145 = vmatprep.subr.mxu1 %v190_v13  ;;  %341 = vmatpush1.msra.mxu0 %v189_v14  ;;  %v1468_v42 = vld [vmem:[%s1803_s1 + $0x38] sm:$0xff]  ;;  %v191_v43 = vld [vmem:[%s1382_s23 + $0x60] sm:$0xff]  ;;  %v193_v44 = vld [vmem:[%s1382_s23 + $0x70] sm:$0xff] }
  0x1a   : > { %1151 = vmatpush1.msra.mxu1 %v189_v14  ;;  %342 = vmatprep.subr.mxu0 %v180_v15  ;;  %v182_v45 = vld [vmem:[%s1382_s23 + $0x18] sm:$0xff]  ;;  %v184_v46 = vld [vmem:[%s1382_s23 + $0x28] sm:$0xff]  ;;  %v181_v47 = vld [vmem:[%s1382_s23 + $0x10] sm:$0xff] }
  0x1b   : > { %1146 = vmatprep.subr.mxu1 %v180_v15  ;;  %343 = vmatpush1.msra.mxu0 %v179_v16  ;;  %v183_v48 = vld [vmem:[%s1382_s23 + $0x20] sm:$0xff]  ;;  %v236_v49 = vld [vmem:[%s1382_s23 + $0x1c8] sm:$0xff]  ;;  %v238_v50 = vld [vmem:[%s1382_s23 + $0x1d8] sm:$0xff] }
  0x1c   : > { %1152 = vmatpush1.msra.mxu1 %v179_v16  ;;  %1099 = vmatmul.mubr.msk.f32.vlgmr.msra.gmra.mxu0 %vm287_vm0, %v1399_v17  ;;  %v235_v51 = vld [vmem:[%s1382_s23 + $0x1c0] sm:$0xff]  ;;  %v237_v52 = vld [vmem:[%s1382_s23 + $0x1d0] sm:$0xff]  ;;  %v226_v53 = vld [vmem:[%s1382_s23 + $0x178] sm:$0xff] }
  0x1d   : > { %1103 = vmatmul.mubr.msk.f32.vlgmr.msra.gmra.mxu1 %vm287_vm0, %v1404_v18  ;;  %445 = vmatprep.subr.mxu1 %v232_v19  ;;  %v228_v54 = vld [vmem:[%s1382_s23 + $0x188] sm:$0xff]  ;;  %v225_v55 = vld [vmem:[%s1382_s23 + $0x170] sm:$0xff]  ;;  %v227_v56 = vld [vmem:[%s1382_s23 + $0x180] sm:$0xff] }
  0x1e   : > { %558 = vmatprep.subr.mxu0 %v234_v20  ;;  %446 = vmatpush1.msra.mxu1 %v231_v21  ;;  %v216_v57 = vld [vmem:[%s1382_s23 + $0x128] sm:$0xff]  ;;  %v218_v58 = vld [vmem:[%s1382_s23 + $0x138] sm:$0xff]  ;;  %v215_v59 = vld [vmem:[%s1382_s23 + $0x120] sm:$0xff] }
  0x1f   : > { %559 = vmatpush1.msra.mxu0 %v233_v22  ;;  %382 = vmatprep.mubr.f32.mxu0 %v1335_v0  ;;  %v217_v60 = vld [vmem:[%s1382_s23 + $0x130] sm:$0xff]  ;;  %v206_v61 = vld [vmem:[%s1382_s23 + $0xd8] sm:$0xff]  ;;  %v208_v62 = vld [vmem:[%s1382_s23 + $0xe8] sm:$0xff] }
  0x20   : > { %406 = vmatprep.mubr.f32.mxu1 %v1335_v0  ;;  %447 = vmatprep.subr.mxu1 %v222_v23  ;;  %v205_v63 = vld [vmem:[%s1382_s23 + $0xd0] sm:$0xff]  ;;  %v207_v1 = vld [vmem:[%s1382_s23 + $0xe0] sm:$0xff]  ;;  %v196_v2 = vld [vmem:[%s1382_s23 + $0x88] sm:$0xff] }
  0x21   : > { %560 = vmatprep.subr.mxu0 %v224_v24  ;;  %1100 = vmatmul.mubr.msk.f32.gmra.mxu0 %vm287_vm0, %v1419_v25  ;;  %v198_v3 = vld [vmem:[%s1382_s23 + $0x98] sm:$0xff]  ;;  %v195_v4 = vld [vmem:[%s1382_s23 + $0x80] sm:$0xff]  ;;  %v197_v5 = vld [vmem:[%s1382_s23 + $0x90] sm:$0xff] }
  0x22   : > { %1104 = vmatmul.mubr.msk.f32.gmra.mxu1 %vm287_vm0, %v1424_v26  ;;  %561 = vmatpush1.msra.mxu0 %v223_v28  ;;  %v186_v6 = vld [vmem:[%s1382_s23 + $0x38] sm:$0xff]  ;;  %v188_v7 = vld [vmem:[%s1382_s23 + $0x48] sm:$0xff]  ;;  %v185_v8 = vld [vmem:[%s1382_s23 + $0x30] sm:$0xff] }
  0x23   : > { %448 = vmatpush1.msra.mxu1 %v221_v27  ;;  %562 = vmatprep.subr.mxu0 %v214_v30  ;;  %v187_v9 = vld [vmem:[%s1382_s23 + $0x40] sm:$0xff]  ;;  %v242_v10 = vld [vmem:[%s1804_s2 + $0x18] sm:$0xff]  ;;  %v244_v12 = vld [vmem:[%s1804_s2 + $0x28] sm:$0xff] }
  0x24   : > { %449 = vmatprep.subr.mxu1 %v212_v29  ;;  %388 = vmatprep.mubr.f32.mxu0 %v1335_v0  ;;  %v243_v11 = vld [vmem:[%s1804_s2 + $0x20] sm:$0xff]  ;;  %v245_v13 = vld [vmem:[%s1804_s2 + $0x30] sm:$0xff]  ;;  %v246_v14 = vld [vmem:[%s1804_s2 + $0x38] sm:$0xff] }
  0x25   : > { %412 = vmatprep.mubr.f32.mxu1 %v1335_v0  ;;  %450 = vmatpush1.msra.mxu1 %v211_v31 }
  0x26   : > { %563 = vmatpush1.msra.mxu0 %v213_v32  ;;  %1105 = vmatmul.mubr.msk.f32.gmra.mxu1 %vm287_vm0, %v1446_v34 }
  0x27   : > { %1101 = vmatmul.mubr.msk.f32.gmra.mxu0 %vm287_vm0, %v1441_v33  ;;  %451 = vmatprep.subr.mxu1 %v202_v35 }
  0x28   : > { %564 = vmatprep.subr.mxu0 %v204_v36  ;;  %452 = vmatpush1.msra.mxu1 %v201_v37 }
  0x29   : > { %565 = vmatpush1.msra.mxu0 %v203_v38  ;;  %394 = vmatprep.mubr.f32.mxu0 %v1335_v0 }
  0x2a   : > { %418 = vmatprep.mubr.f32.mxu1 %v1335_v0  ;;  %453 = vmatprep.subr.mxu1 %v192_v39 }
  0x2b   : > { %566 = vmatprep.subr.mxu0 %v194_v40  ;;  %1102 = vmatmul.mubr.msk.f32.gmra.mxu0 %vm287_vm0, %v1463_v41 }
  0x2c   : > { %1106 = vmatmul.mubr.msk.f32.gmra.mxu1 %vm287_vm0, %v1468_v42  ;;  %567 = vmatpush1.msra.mxu0 %v193_v44 }
  0x2d   : > { %454 = vmatpush1.msra.mxu1 %v191_v43  ;;  %568 = vmatprep.subr.mxu0 %v184_v46 }
  0x2e   : > { %455 = vmatprep.subr.mxu1 %v182_v45  ;;  %489 = vmatprep.mubr.f32.mxu1 %v1335_v0 }
  0x2f   : > { %456 = vmatpush1.msra.mxu1 %v181_v47  ;;  %569 = vmatpush1.msra.mxu0 %v183_v48 }
  0x30   : > { %602 = vmatprep.mubr.f32.mxu0 %v1335_v0  ;;  %1107 = vmatmul.mubr.msk.f32.vlgmr.msra.gmra.mxu1 %vm287_vm0, %v1399_v17 }
  0x31   : > { %1115 = vmatmul.mubr.msk.f32.vlgmr.msra.gmra.mxu0 %vm287_vm0, %v1399_v17  ;;  %671 = vmatprep.subr.mxu1 %v236_v49 }
  0x32   : > { %784 = vmatprep.subr.mxu0 %v238_v50  ;;  %672 = vmatpush1.msra.mxu1 %v235_v51 }
  0x33   : > { %785 = vmatpush1.msra.mxu0 %v237_v52  ;;  %495 = vmatprep.mubr.f32.mxu1 %v1335_v0 }
  0x34   : > { %608 = vmatprep.mubr.f32.mxu0 %v1335_v0  ;;  %1108 = vmatmul.mubr.msk.f32.gmra.mxu1 %vm287_vm0, %v1419_v25 }
  0x35   : > { %1116 = vmatmul.mubr.msk.f32.gmra.mxu0 %vm287_vm0, %v1419_v25  ;;  %673 = vmatprep.subr.mxu1 %v226_v53 }
  0x36   : > { %786 = vmatprep.subr.mxu0 %v228_v54  ;;  %501 = vmatprep.mubr.f32.mxu1 %v1335_v0 }
  0x37   : > { %614 = vmatprep.mubr.f32.mxu0 %v1335_v0  ;;  %674 = vmatpush1.msra.mxu1 %v225_v55 }
  0x38   : > { %787 = vmatpush1.msra.mxu0 %v227_v56  ;;  %1109 = vmatmul.mubr.msk.f32.gmra.mxu1 %vm287_vm0, %v1441_v33 }
  0x39   : > { %1117 = vmatmul.mubr.msk.f32.gmra.mxu0 %vm287_vm0, %v1441_v33  ;;  %507 = vmatprep.mubr.f32.mxu1 %v1335_v0 }
  0x3a   : > { %620 = vmatprep.mubr.f32.mxu0 %v1335_v0  ;;  %675 = vmatprep.subr.mxu1 %v216_v57 }
  0x3b   : > { %788 = vmatprep.subr.mxu0 %v218_v58  ;;  %676 = vmatpush1.msra.mxu1 %v215_v59 }
  0x3c   : > { %789 = vmatpush1.msra.mxu0 %v217_v60  ;;  %1110 = vmatmul.mubr.msk.f32.gmra.mxu1 %vm287_vm0, %v1463_v41 }
  0x3d   : > { %1118 = vmatmul.mubr.msk.f32.gmra.mxu0 %vm287_vm0, %v1463_v41  ;;  %513 = vmatprep.mubr.f32.mxu1 %v1335_v0 }
  0x3e   : > { %626 = vmatprep.mubr.f32.mxu0 %v1335_v0  ;;  %677 = vmatprep.subr.mxu1 %v206_v61 }
  0x3f   : > { %790 = vmatprep.subr.mxu0 %v208_v62  ;;  %678 = vmatpush1.msra.mxu1 %v205_v63 }
  0x40   : > { %791 = vmatpush1.msra.mxu0 %v207_v1  ;;  %1111 = vmatmul.mubr.msk.f32.gmra.mxu1 %vm287_vm0, %v1404_v18 }
  0x41   : > { %1119 = vmatmul.mubr.msk.f32.gmra.mxu0 %vm287_vm0, %v1404_v18  ;;  %519 = vmatprep.mubr.f32.mxu1 %v1335_v0 }
  0x42   : > { %632 = vmatprep.mubr.f32.mxu0 %v1335_v0  ;;  %679 = vmatprep.subr.mxu1 %v196_v2 }
  0x43   : > { %792 = vmatprep.subr.mxu0 %v198_v3  ;;  %680 = vmatpush1.msra.mxu1 %v195_v4 }
  0x44   : > { %793 = vmatpush1.msra.mxu0 %v197_v5  ;;  %1112 = vmatmul.mubr.msk.f32.gmra.mxu1 %vm287_vm0, %v1424_v26 }
  0x45   : > { %1120 = vmatmul.mubr.msk.f32.gmra.mxu0 %vm287_vm0, %v1424_v26  ;;  %525 = vmatprep.mubr.f32.mxu1 %v1335_v0 }
  0x46   : > { %638 = vmatprep.mubr.f32.mxu0 %v1335_v0  ;;  %681 = vmatprep.subr.mxu1 %v186_v6 }
  0x47   : > { %794 = vmatprep.subr.mxu0 %v188_v7  ;;  %682 = vmatpush1.msra.mxu1 %v185_v8 }
  0x48   : > { %795 = vmatpush1.msra.mxu0 %v187_v9  ;;  %1113 = vmatmul.mubr.msk.f32.gmra.mxu1 %vm287_vm0, %v1446_v34 }
  0x49   : > { %1121 = vmatmul.mubr.msk.f32.gmra.mxu0 %vm287_vm0, %v1446_v34  ;;  %531 = vmatprep.mubr.f32.mxu1 %v1335_v0 }
  0x4a   : > { %644 = vmatprep.mubr.f32.mxu0 %v1335_v0  ;;  %264 = vperm.xlu1 %1166, %v242_v10  }
  0x4b   : > { %269 = vperm.xlu0 %1165, %v243_v11  }
  0x4c   : > { %1114 = vmatmul.mubr.msk.f32.gmra.mxu1 %vm287_vm0, %v1468_v42 }
  0x4d   : > { %1122 = vmatmul.mubr.msk.f32.gmra.mxu0 %vm287_vm0, %v1468_v42  ;;  %715 = vmatprep.mubr.f32.mxu1 %v1335_v0 }
  0x4e   : > { %828 = vmatprep.mubr.f32.mxu0 %v1335_v0  ;;  %274 = vperm.xlu1 %1166, %v244_v12  }
  0x4f   : > { %279 = vperm.xlu0 %1165, %v245_v13  }
  0x50   : > { %1123 = vmatmul.mubr.msk.f32.vlgmr.msra.gmra.mxu1 %vm287_vm0, %v1399_v17 }
  0x51   : > { %1131 = vmatmul.mubr.msk.f32.vlgmr.msra.gmra.mxu0 %vm287_vm0, %v1399_v17  ;;  %721 = vmatprep.mubr.f32.mxu1 %v1335_v0 }
  0x52   : > { %834 = vmatprep.mubr.f32.mxu0 %v1335_v0  ;;  %284 = vperm.xlu1 %1166, %v246_v14  }
  0x54   : > { %1124 = vmatmul.mubr.msk.f32.gmra.mxu1 %vm287_vm0, %v1419_v25 }
  0x55   : > { %1132 = vmatmul.mubr.msk.f32.gmra.mxu0 %vm287_vm0, %v1419_v25  ;;  %727 = vmatprep.mubr.f32.mxu1 %v1335_v0 }
  0x56   : > { %840 = vmatprep.mubr.f32.mxu0 %v1335_v0 }
  0x58   : > { %1125 = vmatmul.mubr.msk.f32.gmra.mxu1 %vm287_vm0, %v1441_v33 }
  0x59   : > { %1133 = vmatmul.mubr.msk.f32.gmra.mxu0 %vm287_vm0, %v1441_v33  ;;  %733 = vmatprep.mubr.f32.mxu1 %v1335_v0 }
  0x5a   : > { %846 = vmatprep.mubr.f32.mxu0 %v1335_v0 }
  0x5c   : > { %1126 = vmatmul.mubr.msk.f32.gmra.mxu1 %vm287_vm0, %v1463_v41 }
  0x5d   : > { %1134 = vmatmul.mubr.msk.f32.gmra.mxu0 %vm287_vm0, %v1463_v41  ;;  %739 = vmatprep.mubr.f32.mxu1 %v1335_v0 }
  0x5e   : > { %852 = vmatprep.mubr.f32.mxu0 %v1335_v0 }
  0x60   : > { %1127 = vmatmul.mubr.msk.f32.gmra.mxu1 %vm287_vm0, %v1404_v18 }
  0x61   : > { %1135 = vmatmul.mubr.msk.f32.gmra.mxu0 %vm287_vm0, %v1404_v18  ;;  %745 = vmatprep.mubr.f32.mxu1 %v1335_v0 }
  0x62   : > { %858 = vmatprep.mubr.f32.mxu0 %v1335_v0 }
  0x64   : > { %1128 = vmatmul.mubr.msk.f32.gmra.mxu1 %vm287_vm0, %v1424_v26 }
  0x65   : > { %1136 = vmatmul.mubr.msk.f32.gmra.mxu0 %vm287_vm0, %v1424_v26  ;;  %751 = vmatprep.mubr.f32.mxu1 %v1335_v0 }
  0x66   : > { %864 = vmatprep.mubr.f32.mxu0 %v1335_v0 }
  0x68   : > { %1129 = vmatmul.mubr.msk.f32.gmra.mxu1 %vm287_vm0, %v1446_v34 }
  0x69   : > { %1137 = vmatmul.mubr.msk.f32.gmra.mxu0 %vm287_vm0, %v1446_v34  ;;  %757 = vmatprep.mubr.f32.mxu1 %v1335_v0 }
  0x6a   : > { %870 = vmatprep.mubr.f32.mxu0 %v1335_v0 }
  0x6c   : > { %1130 = vmatmul.mubr.msk.f32.gmra.mxu1 %vm287_vm0, %v1468_v42 }
  0x6d   : > { %1138 = vmatmul.mubr.msk.f32.gmra.mxu0 %vm287_vm0, %v1468_v42 }
  0x89   : > { %v1617_v15 = vpop.permute.xlu0 %249  ;;  %v1619_v16 = vpop.permute.xlu1 %259 }
  0x8d   : > { %v1621_v17 = vpop.permute.xlu0 %254 }
  0xc5   : > { %v1623_v18 = vpop.permute.xlu1 %264 }
  0xc6   : > { %v1625_v19 = vpop.permute.xlu0 %269 }
  0xc9   : > { %v1631_v27 = vpop.permute.xlu1 %274 }
  0xca   : > { %v1637_v36 = vpop.permute.xlu0 %279 }
  0xcd   : > { %v1644_v45 = vpop.permute.xlu1 %284 }
  0xdc   : > { %v378_v20 = vpop.f32.mrf.mxu0 }
  0xdd   : > { %v402_v21 = vpop.f32.mrf.mxu1  ;;  %v379_v0 = vadd.f32 %v378_v20, %v1617_v15 }
  0xde   : > { %v403_v22 = vadd.f32 %v402_v21, %v1625_v19  ;;  %v380_v23 = vpop.f32.mrf.mxu0 }
  0xdf   : > { %v404_v24 = vpop.f32.mrf.mxu1  ;;  %1167 = vtanh.f32 %v379_v0  ;;  %v381_v25 = vadd.f32 %v380_v23, %v1617_v15 }
  0xe0   : > { %v405_v26 = vadd.f32 %v404_v24, %v1625_v19  ;;  %1169 = vtanh.f32 %v403_v22 }
  0xe1   : > { %1171 = vtanh.f32 %v381_v25  ;;  %v384_v28 = vpop.f32.mrf.mxu0 }
  0xe2   : > { %v408_v29 = vpop.f32.mrf.mxu1  ;;  %1173 = vtanh.f32 %v405_v26  ;;  %v385_v30 = vadd.f32 %v384_v28, %v1621_v17 }
  0xe3   : > { %v409_v31 = vadd.f32 %v408_v29, %v1631_v27  ;;  %v386_v32 = vpop.f32.mrf.mxu0 }
  0xe4   : > { %v410_v33 = vpop.f32.mrf.mxu1  ;;  %1175 = vtanh.f32 %v385_v30  ;;  %v387_v34 = vadd.f32 %v386_v32, %v1621_v17 }
  0xe5   : > { %v411_v35 = vadd.f32 %v410_v33, %v1631_v27  ;;  %1177 = vtanh.f32 %v409_v31 }
  0xe6   : > { %1179 = vtanh.f32 %v387_v34  ;;  %v414_v38 = vpop.f32.mrf.mxu1 }
  0xe7   : > { %v390_v37 = vpop.f32.mrf.mxu0  ;;  %1181 = vtanh.f32 %v411_v35  ;;  %v415_v40 = vadd.f32 %v414_v38, %v1637_v36 }
  0xe8   : > { %v391_v39 = vadd.f32 %v390_v37, %v1619_v16  ;;  %v416_v42 = vpop.f32.mrf.mxu1 }
  0xe9   : > { %v392_v41 = vpop.f32.mrf.mxu0  ;;  %v417_v44 = vadd.f32 %v416_v42, %v1637_v36 }
  0xea   : > { %1183 = vtanh.f32 %v391_v39  ;;  %v393_v43 = vadd.f32 %v392_v41, %v1619_v16 }
  0xeb   : > { %1185 = vtanh.f32 %v415_v40  ;;  %v396_v46 = vpop.f32.mrf.mxu0 }
  0xec   : > { %1187 = vtanh.f32 %v393_v43  ;;  %v420_v47 = vpop.f32.mrf.mxu1  ;;  %v1168_v48 = vpop.eup %1167  ;;  %v397_v49 = vadd.f32 %v396_v46, %v1623_v18 }
  0xed   : > { %1189 = vtanh.f32 %v417_v44  ;;  %v421_v50 = vadd.f32 %v420_v47, %v1644_v45  ;;  %v1170_v51 = vpop.eup %1169  ;;  %957 = vst [vmem:[%s1649_s13] sm:$0xff] %v1168_v48  ;;  %v398_v52 = vpop.f32.mrf.mxu0 }
  0xee   : > { %v422_v53 = vpop.f32.mrf.mxu1  ;;  %v1172_v54 = vpop.eup %1171  ;;  %997 = vst [vmem:[%s1649_s13 + $0x140] sm:$0xff] %v1170_v51  ;;  %1191 = vtanh.f32 %v397_v49  ;;  %v399_v55 = vadd.f32 %v398_v52, %v1623_v18 }
  0xef   : > { %v423_v56 = vadd.f32 %v422_v53, %v1644_v45  ;;  %v1174_v57 = vpop.eup %1173  ;;  %958 = vst [vmem:[%s1649_s13 + $0x8] sm:$0xff] %v1172_v54  ;;  %1193 = vtanh.f32 %v421_v50 }
  0xf0   : > { %998 = vst [vmem:[%s1649_s13 + $0x148] sm:$0xff] %v1174_v57  ;;  %1195 = vtanh.f32 %v399_v55  ;;  %v491_v58 = vpop.f32.mrf.mxu1 }
  0xf1   : > { %v604_v59 = vpop.f32.mrf.mxu0  ;;  %v1176_v60 = vpop.eup %1175  ;;  %1197 = vtanh.f32 %v423_v56  ;;  %v492_v61 = vadd.f32 %v491_v58, %v1617_v15 }
  0xf2   : > { %v605_v62 = vadd.f32 %v604_v59, %v1617_v15  ;;  %v1178_v63 = vpop.eup %1177  ;;  %967 = vst [vmem:[%s1649_s13 + $0x50] sm:$0xff] %v1176_v60  ;;  %v493_v1 = vpop.f32.mrf.mxu1 }
  0xf3   : > { %v606_v2 = vpop.f32.mrf.mxu0  ;;  %v1180_v3 = vpop.eup %1179  ;;  %1007 = vst [vmem:[%s1649_s13 + $0x190] sm:$0xff] %v1178_v63  ;;  %1199 = vtanh.f32 %v492_v61  ;;  %v494_v4 = vadd.f32 %v493_v1, %v1617_v15 }
  0xf4   : > { %v607_v5 = vadd.f32 %v606_v2, %v1617_v15  ;;  %v1182_v6 = vpop.eup %1181  ;;  %968 = vst [vmem:[%s1649_s13 + $0x58] sm:$0xff] %v1180_v3  ;;  %1201 = vtanh.f32 %v605_v62  ;;  %v497_v7 = vpop.f32.mrf.mxu1 }
  0xf5   : > { %v610_v8 = vpop.f32.mrf.mxu0  ;;  %1008 = vst [vmem:[%s1649_s13 + $0x198] sm:$0xff] %v1182_v6  ;;  %1203 = vtanh.f32 %v494_v4  ;;  %v498_v9 = vadd.f32 %v497_v7, %v1621_v17 }
  0xf6   : > { %v611_v10 = vadd.f32 %v610_v8, %v1621_v17  ;;  %1205 = vtanh.f32 %v607_v5  ;;  %v499_v12 = vpop.f32.mrf.mxu1 }
  0xf7   : > { %v1184_v11 = vpop.eup %1183  ;;  %v612_v13 = vpop.f32.mrf.mxu0  ;;  %1207 = vtanh.f32 %v498_v9  ;;  %v500_v20 = vadd.f32 %v499_v12, %v1621_v17 }
  0xf8   : > { %v1186_v14 = vpop.eup %1185  ;;  %977 = vst [vmem:[%s1649_s13 + $0xa0] sm:$0xff] %v1184_v11  ;;  %v613_v21 = vadd.f32 %v612_v13, %v1621_v17  ;;  %1209 = vtanh.f32 %v611_v10  ;;  %v503_v22 = vpop.f32.mrf.mxu1 }
  0xf9   : > { %v1188_v0 = vpop.eup %1187  ;;  %1017 = vst [vmem:[%s1649_s13 + $0x1e0] sm:$0xff] %v1186_v14  ;;  %v616_v23 = vpop.f32.mrf.mxu0  ;;  %1211 = vtanh.f32 %v500_v20  ;;  %v504_v25 = vadd.f32 %v503_v22, %v1619_v16 }
  0xfa   : > { %v1190_v24 = vpop.eup %1189  ;;  %978 = vst [vmem:[%s1649_s13 + $0xa8] sm:$0xff] %v1188_v0  ;;  %v617_v26 = vadd.f32 %v616_v23, %v1619_v16  ;;  %1213 = vtanh.f32 %v613_v21  ;;  %v505_v28 = vpop.f32.mrf.mxu1 }
  0xfb   : > { %1018 = vst [vmem:[%s1649_s13 + $0x1e8] sm:$0xff] %v1190_v24  ;;  %v618_v29 = vpop.f32.mrf.mxu0  ;;  %v1192_v30 = vpop.eup %1191  ;;  %1215 = vtanh.f32 %v504_v25  ;;  %v506_v31 = vadd.f32 %v505_v28, %v1619_v16 }
  0xfc   : > { %v619_v32 = vadd.f32 %v618_v29, %v1619_v16  ;;  %v1194_v33 = vpop.eup %1193  ;;  %987 = vst [vmem:[%s1649_s13 + $0xf0] sm:$0xff] %v1192_v30  ;;  %1217 = vtanh.f32 %v617_v26  ;;  %v509_v34 = vpop.f32.mrf.mxu1 }
  0xfd   : > { %v622_v35 = vpop.f32.mrf.mxu0  ;;  %v1196_v37 = vpop.eup %1195  ;;  %1027 = vst [vmem:[%s1649_s13 + $0x230] sm:$0xff] %v1194_v33  ;;  %1219 = vtanh.f32 %v506_v31  ;;  %v510_v38 = vadd.f32 %v509_v34, %v1623_v18 }
  0xfe   : > { %v623_v39 = vadd.f32 %v622_v35, %v1623_v18  ;;  %v1198_v40 = vpop.eup %1197  ;;  %988 = vst [vmem:[%s1649_s13 + $0xf8] sm:$0xff] %v1196_v37  ;;  %1221 = vtanh.f32 %v619_v32  ;;  %v511_v41 = vpop.f32.mrf.mxu1 }
  0xff   : > { %v624_v42 = vpop.f32.mrf.mxu0  ;;  %1028 = vst [vmem:[%s1649_s13 + $0x238] sm:$0xff] %v1198_v40  ;;  %1223 = vtanh.f32 %v510_v38  ;;  %v512_v43 = vadd.f32 %v511_v41, %v1623_v18 }
 0x100   : > { %v625_v44 = vadd.f32 %v624_v42, %v1623_v18  ;;  %v1200_v46 = vpop.eup %1199  ;;  %1225 = vtanh.f32 %v623_v39  ;;  %v515_v47 = vpop.f32.mrf.mxu1 }
 0x101   : > { %v628_v48 = vpop.f32.mrf.mxu0  ;;  %v1202_v49 = vpop.eup %1201  ;;  %959 = vst [vmem:[%s1649_s13 + $0x10] sm:$0xff] %v1200_v46  ;;  %1227 = vtanh.f32 %v512_v43  ;;  %v516_v50 = vadd.f32 %v515_v47, %v1625_v19 }
 0x102   : > { %v629_v51 = vadd.f32 %v628_v48, %v1625_v19  ;;  %v1204_v52 = vpop.eup %1203  ;;  %961 = vst [vmem:[%s1649_s13 + $0x20] sm:$0xff] %v1202_v49  ;;  %1229 = vtanh.f32 %v625_v44  ;;  %v517_v53 = vpop.f32.mrf.mxu1 }
 0x103   : > { %v630_v54 = vpop.f32.mrf.mxu0  ;;  %v1206_v55 = vpop.eup %1205  ;;  %960 = vst [vmem:[%s1649_s13 + $0x18] sm:$0xff] %v1204_v52  ;;  %1231 = vtanh.f32 %v516_v50  ;;  %v518_v56 = vadd.f32 %v517_v53, %v1625_v19 }
 0x104   : > { %v631_v57 = vadd.f32 %v630_v54, %v1625_v19  ;;  %v1208_v58 = vpop.eup %1207  ;;  %962 = vst [vmem:[%s1649_s13 + $0x28] sm:$0xff] %v1206_v55  ;;  %1233 = vtanh.f32 %v629_v51  ;;  %v521_v59 = vpop.f32.mrf.mxu1 }
 0x105   : > { %v634_v60 = vpop.f32.mrf.mxu0  ;;  %v1210_v61 = vpop.eup %1209  ;;  %969 = vst [vmem:[%s1649_s13 + $0x60] sm:$0xff] %v1208_v58  ;;  %1235 = vtanh.f32 %v518_v56  ;;  %v522_v62 = vadd.f32 %v521_v59, %v1631_v27 }
 0x106   : > { %v635_v63 = vadd.f32 %v634_v60, %v1631_v27  ;;  %v1212_v1 = vpop.eup %1211  ;;  %971 = vst [vmem:[%s1649_s13 + $0x70] sm:$0xff] %v1210_v61  ;;  %1237 = vtanh.f32 %v631_v57  ;;  %v523_v2 = vpop.f32.mrf.mxu1 }
 0x107   : > { %v636_v3 = vpop.f32.mrf.mxu0  ;;  %v1214_v4 = vpop.eup %1213  ;;  %970 = vst [vmem:[%s1649_s13 + $0x68] sm:$0xff] %v1212_v1  ;;  %1239 = vtanh.f32 %v522_v62  ;;  %v524_v5 = vadd.f32 %v523_v2, %v1631_v27 }
 0x108   : > { %v637_v6 = vadd.f32 %v636_v3, %v1631_v27  ;;  %v1216_v7 = vpop.eup %1215  ;;  %972 = vst [vmem:[%s1649_s13 + $0x78] sm:$0xff] %v1214_v4  ;;  %1241 = vtanh.f32 %v635_v63  ;;  %v527_v8 = vpop.f32.mrf.mxu1 }
 0x109   : > { %v640_v9 = vpop.f32.mrf.mxu0  ;;  %v1218_v10 = vpop.eup %1217  ;;  %979 = vst [vmem:[%s1649_s13 + $0xb0] sm:$0xff] %v1216_v7  ;;  %1243 = vtanh.f32 %v524_v5  ;;  %v528_v11 = vadd.f32 %v527_v8, %v1637_v36 }
 0x10a   : > { %v641_v12 = vadd.f32 %v640_v9, %v1637_v36  ;;  %v1220_v13 = vpop.eup %1219  ;;  %981 = vst [vmem:[%s1649_s13 + $0xc0] sm:$0xff] %v1218_v10  ;;  %1245 = vtanh.f32 %v637_v6  ;;  %v529_v14 = vpop.f32.mrf.mxu1 }
 0x10b   : > { %v642_v20 = vpop.f32.mrf.mxu0  ;;  %v1222_v21 = vpop.eup %1221  ;;  %980 = vst [vmem:[%s1649_s13 + $0xb8] sm:$0xff] %v1220_v13  ;;  %1247 = vtanh.f32 %v528_v11  ;;  %v530_v0 = vadd.f32 %v529_v14, %v1637_v36 }
 0x10c   : > { %v643_v22 = vadd.f32 %v642_v20, %v1637_v36  ;;  %v1224_v23 = vpop.eup %1223  ;;  %982 = vst [vmem:[%s1649_s13 + $0xc8] sm:$0xff] %v1222_v21  ;;  %1249 = vtanh.f32 %v641_v12  ;;  %v533_v24 = vpop.f32.mrf.mxu1 }
 0x10d   : > { %v646_v25 = vpop.f32.mrf.mxu0  ;;  %v1226_v26 = vpop.eup %1225  ;;  %989 = vst [vmem:[%s1649_s13 + $0x100] sm:$0xff] %v1224_v23  ;;  %1251 = vtanh.f32 %v530_v0  ;;  %v534_v28 = vadd.f32 %v533_v24, %v1644_v45 }
 0x10e   : > { %v647_v29 = vadd.f32 %v646_v25, %v1644_v45  ;;  %v1228_v30 = vpop.eup %1227  ;;  %991 = vst [vmem:[%s1649_s13 + $0x110] sm:$0xff] %v1226_v26  ;;  %1253 = vtanh.f32 %v643_v22  ;;  %v535_v31 = vpop.f32.mrf.mxu1 }
 0x10f   : > { %v648_v32 = vpop.f32.mrf.mxu0  ;;  %v1230_v33 = vpop.eup %1229  ;;  %990 = vst [vmem:[%s1649_s13 + $0x108] sm:$0xff] %v1228_v30  ;;  %1255 = vtanh.f32 %v534_v28  ;;  %v536_v34 = vadd.f32 %v535_v31, %v1644_v45 }
 0x110   : > { %v649_v35 = vadd.f32 %v648_v32, %v1644_v45  ;;  %v1232_v37 = vpop.eup %1231  ;;  %992 = vst [vmem:[%s1649_s13 + $0x118] sm:$0xff] %v1230_v33  ;;  %1257 = vtanh.f32 %v647_v29  ;;  %v717_v38 = vpop.f32.mrf.mxu1 }
 0x111   : > { %v830_v39 = vpop.f32.mrf.mxu0  ;;  %v1234_v40 = vpop.eup %1233  ;;  %999 = vst [vmem:[%s1649_s13 + $0x150] sm:$0xff] %v1232_v37  ;;  %1259 = vtanh.f32 %v536_v34  ;;  %v718_v41 = vadd.f32 %v717_v38, %v1617_v15 }
 0x112   : > { %v831_v42 = vadd.f32 %v830_v39, %v1617_v15  ;;  %v1236_v43 = vpop.eup %1235  ;;  %1001 = vst [vmem:[%s1649_s13 + $0x160] sm:$0xff] %v1234_v40  ;;  %1261 = vtanh.f32 %v649_v35  ;;  %v719_v44 = vpop.f32.mrf.mxu1 }
 0x113   : > { %v832_v46 = vpop.f32.mrf.mxu0  ;;  %v1238_v47 = vpop.eup %1237  ;;  %1000 = vst [vmem:[%s1649_s13 + $0x158] sm:$0xff] %v1236_v43  ;;  %1263 = vtanh.f32 %v718_v41  ;;  %v720_v48 = vadd.f32 %v719_v44, %v1617_v15 }
 0x114   : > { %v833_v49 = vadd.f32 %v832_v46, %v1617_v15  ;;  %v1240_v50 = vpop.eup %1239  ;;  %1002 = vst [vmem:[%s1649_s13 + $0x168] sm:$0xff] %v1238_v47  ;;  %1265 = vtanh.f32 %v831_v42  ;;  %v723_v51 = vpop.f32.mrf.mxu1 }
 0x115   : > { %v836_v52 = vpop.f32.mrf.mxu0  ;;  %v1242_v53 = vpop.eup %1241  ;;  %1009 = vst [vmem:[%s1649_s13 + $0x1a0] sm:$0xff] %v1240_v50  ;;  %1267 = vtanh.f32 %v720_v48  ;;  %v724_v54 = vadd.f32 %v723_v51, %v1621_v17 }
 0x116   : > { %v837_v55 = vadd.f32 %v836_v52, %v1621_v17  ;;  %v1244_v56 = vpop.eup %1243  ;;  %1011 = vst [vmem:[%s1649_s13 + $0x1b0] sm:$0xff] %v1242_v53  ;;  %1269 = vtanh.f32 %v833_v49  ;;  %v725_v57 = vpop.f32.mrf.mxu1 }
 0x117   : > { %v838_v15 = vpop.f32.mrf.mxu0  ;;  %v1246_v58 = vpop.eup %1245  ;;  %1010 = vst [vmem:[%s1649_s13 + $0x1a8] sm:$0xff] %v1244_v56  ;;  %1271 = vtanh.f32 %v724_v54  ;;  %v726_v59 = vadd.f32 %v725_v57, %v1621_v17 }
 0x118   : > { %v839_v60 = vadd.f32 %v838_v15, %v1621_v17  ;;  %v1248_v61 = vpop.eup %1247  ;;  %1012 = vst [vmem:[%s1649_s13 + $0x1b8] sm:$0xff] %v1246_v58  ;;  %1273 = vtanh.f32 %v837_v55  ;;  %v729_v62 = vpop.f32.mrf.mxu1 }
 0x119   : > { %v842_v63 = vpop.f32.mrf.mxu0  ;;  %v1250_v1 = vpop.eup %1249  ;;  %1019 = vst [vmem:[%s1649_s13 + $0x1f0] sm:$0xff] %v1248_v61  ;;  %1275 = vtanh.f32 %v726_v59  ;;  %v730_v2 = vadd.f32 %v729_v62, %v1619_v16 }
 0x11a   : > { %v843_v3 = vadd.f32 %v842_v63, %v1619_v16  ;;  %v1252_v4 = vpop.eup %1251  ;;  %1021 = vst [vmem:[%s1649_s13 + $0x200] sm:$0xff] %v1250_v1  ;;  %1277 = vtanh.f32 %v839_v60  ;;  %v731_v5 = vpop.f32.mrf.mxu1 }
 0x11b   : > { %v844_v17 = vpop.f32.mrf.mxu0  ;;  %v1254_v6 = vpop.eup %1253  ;;  %1020 = vst [vmem:[%s1649_s13 + $0x1f8] sm:$0xff] %v1252_v4  ;;  %1279 = vtanh.f32 %v730_v2  ;;  %v732_v7 = vadd.f32 %v731_v5, %v1619_v16 }
 0x11c   : > { %v845_v8 = vadd.f32 %v844_v17, %v1619_v16  ;;  %v1256_v9 = vpop.eup %1255  ;;  %1022 = vst [vmem:[%s1649_s13 + $0x208] sm:$0xff] %v1254_v6  ;;  %1281 = vtanh.f32 %v843_v3  ;;  %v735_v10 = vpop.f32.mrf.mxu1 }
 0x11d   : > { %v848_v11 = vpop.f32.mrf.mxu0  ;;  %v1258_v12 = vpop.eup %1257  ;;  %1029 = vst [vmem:[%s1649_s13 + $0x240] sm:$0xff] %v1256_v9  ;;  %1283 = vtanh.f32 %v732_v7  ;;  %v736_v13 = vadd.f32 %v735_v10, %v1623_v18 }
 0x11e   : > { %v849_v14 = vadd.f32 %v848_v11, %v1623_v18  ;;  %v1260_v20 = vpop.eup %1259  ;;  %1031 = vst [vmem:[%s1649_s13 + $0x250] sm:$0xff] %v1258_v12  ;;  %1285 = vtanh.f32 %v845_v8  ;;  %v737_v21 = vpop.f32.mrf.mxu1 }
 0x11f   : > { %v850_v16 = vpop.f32.mrf.mxu0  ;;  %v1262_v0 = vpop.eup %1261  ;;  %1030 = vst [vmem:[%s1649_s13 + $0x248] sm:$0xff] %v1260_v20  ;;  %1287 = vtanh.f32 %v736_v13  ;;  %v738_v22 = vadd.f32 %v737_v21, %v1623_v18 }
 0x120   : > { %v851_v23 = vadd.f32 %v850_v16, %v1623_v18  ;;  %v1264_v24 = vpop.eup %1263  ;;  %1032 = vst [vmem:[%s1649_s13 + $0x258] sm:$0xff] %v1262_v0  ;;  %1289 = vtanh.f32 %v849_v14  ;;  %v741_v25 = vpop.f32.mrf.mxu1 }
 0x121   : > { %v854_v26 = vpop.f32.mrf.mxu0  ;;  %v1266_v28 = vpop.eup %1265  ;;  %963 = vst [vmem:[%s1649_s13 + $0x30] sm:$0xff] %v1264_v24  ;;  %1291 = vtanh.f32 %v738_v22  ;;  %v742_v29 = vadd.f32 %v741_v25, %v1625_v19 }
 0x122   : > { %v855_v30 = vadd.f32 %v854_v26, %v1625_v19  ;;  %v1268_v31 = vpop.eup %1267  ;;  %965 = vst [vmem:[%s1649_s13 + $0x40] sm:$0xff] %v1266_v28  ;;  %1293 = vtanh.f32 %v851_v23  ;;  %v743_v32 = vpop.f32.mrf.mxu1 }
 0x123   : > { %v856_v18 = vpop.f32.mrf.mxu0  ;;  %v1270_v33 = vpop.eup %1269  ;;  %964 = vst [vmem:[%s1649_s13 + $0x38] sm:$0xff] %v1268_v31  ;;  %1295 = vtanh.f32 %v742_v29  ;;  %v744_v34 = vadd.f32 %v743_v32, %v1625_v19 }
 0x124   : > { %v857_v35 = vadd.f32 %v856_v18, %v1625_v19  ;;  %v1272_v37 = vpop.eup %1271  ;;  %966 = vst [vmem:[%s1649_s13 + $0x48] sm:$0xff] %v1270_v33  ;;  %1297 = vtanh.f32 %v855_v30  ;;  %v747_v38 = vpop.f32.mrf.mxu1 }
 0x125   : > { %v860_v39 = vpop.f32.mrf.mxu0  ;;  %v1274_v40 = vpop.eup %1273  ;;  %973 = vst [vmem:[%s1649_s13 + $0x80] sm:$0xff] %v1272_v37  ;;  %1299 = vtanh.f32 %v744_v34  ;;  %v748_v41 = vadd.f32 %v747_v38, %v1631_v27 }
 0x126   : > { %v861_v42 = vadd.f32 %v860_v39, %v1631_v27  ;;  %v1276_v43 = vpop.eup %1275  ;;  %975 = vst [vmem:[%s1649_s13 + $0x90] sm:$0xff] %v1274_v40  ;;  %1301 = vtanh.f32 %v857_v35  ;;  %v749_v44 = vpop.f32.mrf.mxu1 }
 0x127   : > { %v862_v19 = vpop.f32.mrf.mxu0  ;;  %v1278_v46 = vpop.eup %1277  ;;  %974 = vst [vmem:[%s1649_s13 + $0x88] sm:$0xff] %v1276_v43  ;;  %1303 = vtanh.f32 %v748_v41  ;;  %v750_v47 = vadd.f32 %v749_v44, %v1631_v27 }
 0x128   : > { %v863_v48 = vadd.f32 %v862_v19, %v1631_v27  ;;  %v1280_v49 = vpop.eup %1279  ;;  %976 = vst [vmem:[%s1649_s13 + $0x98] sm:$0xff] %v1278_v46  ;;  %1305 = vtanh.f32 %v861_v42  ;;  %v753_v50 = vpop.f32.mrf.mxu1 }
 0x129   : > { %v866_v51 = vpop.f32.mrf.mxu0  ;;  %v1282_v52 = vpop.eup %1281  ;;  %983 = vst [vmem:[%s1649_s13 + $0xd0] sm:$0xff] %v1280_v49  ;;  %1307 = vtanh.f32 %v750_v47  ;;  %v754_v53 = vadd.f32 %v753_v50, %v1637_v36 }
 0x12a   : > { %v867_v54 = vadd.f32 %v866_v51, %v1637_v36  ;;  %v1284_v55 = vpop.eup %1283  ;;  %985 = vst [vmem:[%s1649_s13 + $0xe0] sm:$0xff] %v1282_v52  ;;  %1309 = vtanh.f32 %v863_v48  ;;  %v755_v56 = vpop.f32.mrf.mxu1 }
 0x12b   : > { %v868_v27 = vpop.f32.mrf.mxu0  ;;  %v1286_v57 = vpop.eup %1285  ;;  %984 = vst [vmem:[%s1649_s13 + $0xd8] sm:$0xff] %v1284_v55  ;;  %1311 = vtanh.f32 %v754_v53  ;;  %v756_v15 = vadd.f32 %v755_v56, %v1637_v36 }
 0x12c   : > { %v869_v58 = vadd.f32 %v868_v27, %v1637_v36  ;;  %v1288_v59 = vpop.eup %1287  ;;  %986 = vst [vmem:[%s1649_s13 + $0xe8] sm:$0xff] %v1286_v57  ;;  %1313 = vtanh.f32 %v867_v54  ;;  %v759_v60 = vpop.f32.mrf.mxu1 }
 0x12d   : > { %v872_v61 = vpop.f32.mrf.mxu0  ;;  %v1290_v62 = vpop.eup %1289  ;;  %993 = vst [vmem:[%s1649_s13 + $0x120] sm:$0xff] %v1288_v59  ;;  %1315 = vtanh.f32 %v756_v15  ;;  %v760_v63 = vadd.f32 %v759_v60, %v1644_v45 }
 0x12e   : > { %v873_v1 = vadd.f32 %v872_v61, %v1644_v45  ;;  %v1292_v2 = vpop.eup %1291  ;;  %995 = vst [vmem:[%s1649_s13 + $0x130] sm:$0xff] %v1290_v62  ;;  %1317 = vtanh.f32 %v869_v58  ;;  %v761_v36 = vpop.f32.mrf.mxu1 }
 0x12f   : > { %v874_v3 = vpop.f32.mrf.mxu0  ;;  %v1294_v4 = vpop.eup %1293  ;;  %994 = vst [vmem:[%s1649_s13 + $0x128] sm:$0xff] %v1292_v2  ;;  %1319 = vtanh.f32 %v760_v63  ;;  %v762_v5 = vadd.f32 %v761_v36, %v1644_v45 }
 0x130   : > { %v875_v17 = vadd.f32 %v874_v3, %v1644_v45  ;;  %v1296_v6 = vpop.eup %1295  ;;  %996 = vst [vmem:[%s1649_s13 + $0x138] sm:$0xff] %v1294_v4  ;;  %1321 = vtanh.f32 %v873_v1 }
 0x131   : > { %v1298_v7 = vpop.eup %1297  ;;  %1003 = vst [vmem:[%s1649_s13 + $0x170] sm:$0xff] %v1296_v6  ;;  %1323 = vtanh.f32 %v762_v5 }
 0x132   : > { %v1300_v8 = vpop.eup %1299  ;;  %1005 = vst [vmem:[%s1649_s13 + $0x180] sm:$0xff] %v1298_v7  ;;  %1325 = vtanh.f32 %v875_v17 }
 0x133   : > { %v1302_v9 = vpop.eup %1301  ;;  %1004 = vst [vmem:[%s1649_s13 + $0x178] sm:$0xff] %v1300_v8 }
 0x134   : > { %v1304_v10 = vpop.eup %1303  ;;  %1006 = vst [vmem:[%s1649_s13 + $0x188] sm:$0xff] %v1302_v9 }
 0x135   : > { %v1306_v45 = vpop.eup %1305  ;;  %1013 = vst [vmem:[%s1649_s13 + $0x1c0] sm:$0xff] %v1304_v10 }
 0x136   : > { %v1308_v11 = vpop.eup %1307  ;;  %1015 = vst [vmem:[%s1649_s13 + $0x1d0] sm:$0xff] %v1306_v45 }
 0x137   : > { %v1310_v12 = vpop.eup %1309  ;;  %1014 = vst [vmem:[%s1649_s13 + $0x1c8] sm:$0xff] %v1308_v11 }
 0x138   : > { %v1312_v13 = vpop.eup %1311  ;;  %1016 = vst [vmem:[%s1649_s13 + $0x1d8] sm:$0xff] %v1310_v12 }
 0x139   : > { %v1314_v14 = vpop.eup %1313  ;;  %1023 = vst [vmem:[%s1649_s13 + $0x210] sm:$0xff] %v1312_v13 }
 0x13a   : > { %v1316_v20 = vpop.eup %1315  ;;  %1025 = vst [vmem:[%s1649_s13 + $0x220] sm:$0xff] %v1314_v14 }
 0x13b   : > { %v1318_v21 = vpop.eup %1317  ;;  %1024 = vst [vmem:[%s1649_s13 + $0x218] sm:$0xff] %v1316_v20 }
 0x13c   : > { %v1320_v16 = vpop.eup %1319  ;;  %1026 = vst [vmem:[%s1649_s13 + $0x228] sm:$0xff] %v1318_v21 }
 0x13d   : > { %v1322_v0 = vpop.eup %1321  ;;  %1033 = vst [vmem:[%s1649_s13 + $0x260] sm:$0xff] %v1320_v16 }
 0x13e   : > { %v1324_v22 = vpop.eup %1323  ;;  %1035 = vst [vmem:[%s1649_s13 + $0x270] sm:$0xff] %v1322_v0 }
 0x13f   : > { %v1326_v23 = vpop.eup %1325  ;;  %1034 = vst [vmem:[%s1649_s13 + $0x268] sm:$0xff] %v1324_v22 }
 0x140   : > { %1036 = vst [vmem:[%s1649_s13 + $0x278] sm:$0xff] %v1326_v23 }
 0x141 PF: > { %s13_s12 = sadd.s32 1, %s1333_s12  }
 0x142   : > { %p10_p4 = scmp.ge.s32.totalorder %s13_s12, 4  }
 0x144   :  { %12 = sbr.rel (!%p10_p4) target bundleno = 1 (0x1), region = 62 }

</bundles_post_ra>
